<compile_context>
chip_gen: v7x
topology: tpu7x:2x2x1
jax: 0.10.0
libtpu: 0.0.40
codegen_flags: <defaults>
</compile_context>

<pallas_src>
import functools

import jax
import jax.numpy as jnp
import numpy as np
from jax import lax
from jax.experimental import pallas as pl
from jax.experimental.pallas import tpu as pltpu


def _embed_kernel(b_tile, M, L, E,
                  tlen_ref,            # scalar prefetch, SMEM (N,) int32
                  ds_ref,              # (b_tile, M, L)   gathered mat2 rows (unmasked)
                  a1_ref,              # (1, L*E) affine slope, mask==1 row (tiled over L)
                  b1_ref,              # (1, L*E) affine bias,  mask==1 row
                  b0_ref,              # (1, L*E) affine bias,  mask==0 row (slope*0 folded)
                  out_ref):            # (b_tile, M, L*E)
    LE = L * E
    i0 = pl.program_id(0) * b_tile     # first batch row handled by this grid step

    # Hoisted broadcasts (JAX does not CSE broadcast_in_dim inside the unrolled loop).
    a1 = jnp.broadcast_to(a1_ref[...], (M, LE))
    b1 = jnp.broadcast_to(b1_ref[...], (M, LE))
    b0 = jnp.broadcast_to(b0_ref[...], (M, LE))
    # Sequence-position iota, identical for every fused batch row.
    pos = lax.broadcasted_iota(jnp.int32, (M, LE), 0)

    for b in range(b_tile):            # static unroll over the fused batch rows
        n_valid = tlen_ref[i0 + b]     # scalar read from SMEM
        ds_b = ds_ref[b]               # (M, L)

        # Lane-expand delta_s across the embedding dim: (M, L) -> (M, L*E),
        # each value repeated E times (matches row-major flatten of (L, E)).
        ds_rep = jnp.concatenate(
            [jnp.broadcast_to(ds_b[:, l:l + 1], (M, E)) for l in range(L)],
            axis=-1)                   # (M, L*E)

        valid = pos < n_valid          # (M, L*E) bool: j < traj_len[row]
        # mask==1: A1*delta_s + B1 ; mask==0: delta_s is 0 in the module, so B0.
        out_ref[b] = jnp.where(valid, ds_rep * a1 + b1, b0).astype(out_ref.dtype)


def embed_forward(traj_loc, mat2, vec, traj_len, l_max, ex, emb_size, emb_tables,
                  out_dtype=jnp.float32):
    """Pallas version of Embed.forward.  Returns (N, M, l_max, emb_size)."""
    su, sl, tu, tl = ex
    emb_su_w, emb_sl_w, emb_tu_w, emb_tl_w = emb_tables
    N, M = vec.shape                   # vec only fixes shapes (see NOTE above)
    L = int(l_max)
    E = int(emb_size)
    LE = L * E
    num_loc = mat2.shape[0]
    assert mat2.shape[1] == L

    f32 = jnp.float32
    emb_su_w = emb_su_w.astype(f32)
    emb_sl_w = emb_sl_w.astype(f32)
    emb_tu_w = emb_tu_w.astype(f32)
    emb_tl_w = emb_tl_w.astype(f32)

    # ---- fold the interpolation into affine coefficients (per mask row) ----
    #   space+time = [ (e_su-e_sl)/(su-sl) + (e_tu-e_tl)/(tu-tl) ] * delta_s
    #              + [ (e_sl*su-e_su*sl)/(su-sl) + (e_tl*tu-e_tu*tl)/(tu-tl) ]
    # Divisions happen once here (inf/nan behaviour for su==sl etc. preserved).
    A = (emb_su_w - emb_sl_w) / (su - sl) + (emb_tu_w - emb_tl_w) / (tu - tl)       # (2, E)
    B = ((emb_sl_w * su - emb_su_w * sl) / (su - sl)
         + (emb_tl_w * tu - emb_tu_w * tl) / (tu - tl))                             # (2, E)
    a1t = jnp.tile(A[1], (L,)).reshape(1, LE)   # slope for mask==1, tiled over l_max
    b1t = jnp.tile(B[1], (L,)).reshape(1, LE)   # bias  for mask==1
    b0t = jnp.tile(B[0], (L,)).reshape(1, LE)   # bias  for mask==0 (delta_s==0 there)

    # ---- glue: data-dependent row gather of mat2 (masked positions are ignored
    # in-kernel via the select, matching the torch loop which never reads them).
    # TODO(synk): move this gather in-kernel (mat2 resident in VMEM + row select)
    # to avoid the extra XLA gather and the (N, M, L) HBM intermediate.
    idx = jnp.clip(traj_loc.astype(jnp.int32) - 1, 0, num_loc - 1)
    ds = jnp.take(mat2.astype(f32), idx, axis=0)                                    # (N, M, L)

    # ---- batch-row fusion: largest divisor of N (capped) that keeps the per-step
    # output block small enough to double-buffer inside default scoped VMEM.
    row_bytes = M * LE * 4
    budget = 2 * 1024 * 1024
    b_tile = 1
    for d in range(1, min(N, 8) + 1):
        if N % d == 0 and d * row_bytes <= max(budget, row_bytes):
            b_tile = d
    grid = (N // b_tile,)

    kernel = functools.partial(_embed_kernel, b_tile, M, L, E)

    grid_spec = pltpu.PrefetchScalarGridSpec(
        num_scalar_prefetch=1,
        grid=grid,
        in_specs=[
            pl.BlockSpec((b_tile, M, L), lambda i, tlen: (i, 0, 0)),
            pl.BlockSpec((1, LE), lambda i, tlen: (0, 0)),   # resident coefficients
            pl.BlockSpec((1, LE), lambda i, tlen: (0, 0)),
            pl.BlockSpec((1, LE), lambda i, tlen: (0, 0)),
        ],
        out_specs=pl.BlockSpec((b_tile, M, LE), lambda i, tlen: (i, 0, 0)),
    )

    out_flat = pl.pallas_call(
        kernel,
        grid_spec=grid_spec,
        out_shape=jax.ShapeDtypeStruct((N, M, LE), out_dtype),
        compiler_params=pltpu.CompilerParams(
            dimension_semantics=("parallel",)),   # v7x: shard batch over both TCs
    )(traj_len.astype(jnp.int32), ds, a1t, b1t, b0t)

    # Free reshape back to the module's output layout.
    return out_flat.reshape(N, M, L, E)


def embed_reference(traj_loc, mat2, vec, traj_len, l_max, ex, emb_size, emb_tables):
    """Pure-JAX reference mirroring the PyTorch forward exactly (all four
    interpolation terms use delta_s, as in the given module)."""
    su, sl, tu, tl = ex
    emb_su_w, emb_sl_w, emb_tu_w, emb_tl_w = emb_tables
    N, M = vec.shape
    pos = jnp.arange(M)[None, :, None]
    mask = jnp.broadcast_to((pos < traj_len[:, None, None]).astype(jnp.int32),
                            (N, M, l_max))
    idx = jnp.clip(traj_loc.astype(jnp.int32) - 1, 0, mat2.shape[0] - 1)
    gathered = jnp.take(mat2.astype(jnp.float32), idx, axis=0)
    delta_s = jnp.where(mask > 0, gathered, 0.0)
    esl = emb_sl_w[mask]
    esu = emb_su_w[mask]
    etl = emb_tl_w[mask]
    etu = emb_tu_w[mask]
    vsl = (delta_s - sl)[..., None]
    vsu = (su - delta_s)[..., None]
    vtl = (delta_s - tl)[..., None]   # module uses delta_s here (not delta_t)
    vtu = (tu - delta_s)[..., None]
    space_interval = (esl * vsu + esu * vsl) / (su - sl)
    time_interval = (etl * vtu + etu * vtl) / (tu - tl)
    return space_interval + time_interval


if __name__ == "__main__":
    N, M, L_MAX, EMB, NUM_LOC = 2, 8, 8, 32, 16
    ex = (100.0, 0.0, 3600.0, 0.0)  # (su, sl, tu, tl)

    key = jax.random.PRNGKey(0)
    k1, k2, k3, k4, k5, k6, k7 = jax.random.split(key, 7)

    # deterministic "nn.Embedding(2, emb_size)" weights
    emb_su_w = jax.random.normal(k1, (2, EMB), jnp.float32)
    emb_sl_w = jax.random.normal(k2, (2, EMB), jnp.float32)
    emb_tu_w = jax.random.normal(k3, (2, EMB), jnp.float32)
    emb_tl_w = jax.random.normal(k4, (2, EMB), jnp.float32)
    emb_tables = (emb_su_w, emb_sl_w, emb_tu_w, emb_tl_w)

    traj_loc = jax.random.randint(k5, (N, M), 1, NUM_LOC + 1, dtype=jnp.int32)
    mat2 = jax.random.uniform(k6, (NUM_LOC, L_MAX), jnp.float32, 0.0, 100.0)
    vec = jax.random.uniform(k7, (N, M), jnp.float32, 0.0, 3600.0)
    traj_len = jnp.array([M, 5], dtype=jnp.int32)

    out = embed_forward(traj_loc, mat2, vec, traj_len, L_MAX, ex, EMB, emb_tables)
    out = jax.block_until_ready(out)

    ref = embed_reference(traj_loc, mat2, vec, traj_len, L_MAX, ex, EMB, emb_tables)
    # Slightly relaxed atol/rtol: the affine-coefficient rewrite reassociates the
    # f32 arithmetic (few-ulp drift vs. the literal formula).
    np.testing.assert_allclose(np.asarray(out), np.asarray(ref),
                               rtol=1e-4, atol=1e-5)
    print("KERNEL_OK")
</pallas_src>

<mosaic_0001>
module attributes {stable_mosaic.version = 11 : i64} {
  func.func @_embed_kernel(%arg0: i32, %arg1: memref<2xi32, #tpu.memory_space<smem>>, %arg2: memref<2x8x8xf32, #tpu.memory_space<vmem>>, %arg3: memref<1x256xf32, #tpu.memory_space<vmem>>, %arg4: memref<1x256xf32, #tpu.memory_space<vmem>>, %arg5: memref<1x256xf32, #tpu.memory_space<vmem>>, %arg6: memref<2x8x256xf32, #tpu.memory_space<vmem>>) attributes {dimension_semantics = [#tpu.dimension_semantics<parallel>], iteration_bounds = array<i64: 1>, scalar_prefetch = 1 : i64, scratch_operands = 0 : i64, tpu.core_type = #tpu.core_type<tc>, window_params = [{transform_indices = @transform_0, window_bounds = array<i64: 2, 8, 8>}, {pipeline_mode = #tpu.pipeline_mode<synchronous>, transform_indices = @transform_1, window_bounds = array<i64: 1, 256>}, {pipeline_mode = #tpu.pipeline_mode<synchronous>, transform_indices = @transform_2, window_bounds = array<i64: 1, 256>}, {pipeline_mode = #tpu.pipeline_mode<synchronous>, transform_indices = @transform_3, window_bounds = array<i64: 1, 256>}, {transform_indices = @transform_4, window_bounds = array<i64: 2, 8, 256>}]} {
    %c2_i32 = arith.constant 2 : i32
    %0 = arith.muli %arg0, %c2_i32 : i32
    %c0 = arith.constant 0 : index
    %c0_0 = arith.constant 0 : index
    %1 = vector.load %arg3[%c0, %c0_0] : memref<1x256xf32, #tpu.memory_space<vmem>>, vector<1x256xf32>
    %2 = vector.shape_cast %1 : vector<1x256xf32> to vector<1x256xf32>
    %3 = vector.broadcast %2 : vector<1x256xf32> to vector<8x256xf32>
    %c0_1 = arith.constant 0 : index
    %c0_2 = arith.constant 0 : index
    %4 = vector.load %arg4[%c0_1, %c0_2] : memref<1x256xf32, #tpu.memory_space<vmem>>, vector<1x256xf32>
    %5 = vector.shape_cast %4 : vector<1x256xf32> to vector<1x256xf32>
    %6 = vector.broadcast %5 : vector<1x256xf32> to vector<8x256xf32>
    %c0_3 = arith.constant 0 : index
    %c0_4 = arith.constant 0 : index
    %7 = vector.load %arg5[%c0_3, %c0_4] : memref<1x256xf32, #tpu.memory_space<vmem>>, vector<1x256xf32>
    %8 = vector.shape_cast %7 : vector<1x256xf32> to vector<1x256xf32>
    %9 = vector.broadcast %8 : vector<1x256xf32> to vector<8x256xf32>
    %10 = tpu.iota {dimensions = array<i32: 0>} : vector<8x256xi32>
    %c0_i32 = arith.constant 0 : i32
    %11 = arith.addi %0, %c0_i32 : i32
    %12 = arith.index_cast %11 : i32 to index
    %13 = memref.load %arg1[%12] : memref<2xi32, #tpu.memory_space<smem>>
    %c0_5 = arith.constant 0 : index
    %c0_6 = arith.constant 0 : index
    %c0_7 = arith.constant 0 : index
    %14 = vector.load %arg2[%c0_5, %c0_6, %c0_7] : memref<2x8x8xf32, #tpu.memory_space<vmem>>, vector<1x8x8xf32>
    %15 = vector.shape_cast %14 : vector<1x8x8xf32> to vector<8x8xf32>
    %16 = vector.extract_strided_slice %15 {offsets = [0, 0], sizes = [8, 1], strides = [1, 1]} : vector<8x8xf32> to vector<8x1xf32>
    %17 = vector.shape_cast %16 : vector<8x1xf32> to vector<8x1xf32>
    %18 = vector.broadcast %17 : vector<8x1xf32> to vector<8x32xf32>
    %19 = vector.extract_strided_slice %15 {offsets = [0, 1], sizes = [8, 1], strides = [1, 1]} : vector<8x8xf32> to vector<8x1xf32>
    %20 = vector.shape_cast %19 : vector<8x1xf32> to vector<8x1xf32>
    %21 = vector.broadcast %20 : vector<8x1xf32> to vector<8x32xf32>
    %22 = vector.extract_strided_slice %15 {offsets = [0, 2], sizes = [8, 1], strides = [1, 1]} : vector<8x8xf32> to vector<8x1xf32>
    %23 = vector.shape_cast %22 : vector<8x1xf32> to vector<8x1xf32>
    %24 = vector.broadcast %23 : vector<8x1xf32> to vector<8x32xf32>
    %25 = vector.extract_strided_slice %15 {offsets = [0, 3], sizes = [8, 1], strides = [1, 1]} : vector<8x8xf32> to vector<8x1xf32>
    %26 = vector.shape_cast %25 : vector<8x1xf32> to vector<8x1xf32>
    %27 = vector.broadcast %26 : vector<8x1xf32> to vector<8x32xf32>
    %28 = vector.extract_strided_slice %15 {offsets = [0, 4], sizes = [8, 1], strides = [1, 1]} : vector<8x8xf32> to vector<8x1xf32>
    %29 = vector.shape_cast %28 : vector<8x1xf32> to vector<8x1xf32>
    %30 = vector.broadcast %29 : vector<8x1xf32> to vector<8x32xf32>
    %31 = vector.extract_strided_slice %15 {offsets = [0, 5], sizes = [8, 1], strides = [1, 1]} : vector<8x8xf32> to vector<8x1xf32>
    %32 = vector.shape_cast %31 : vector<8x1xf32> to vector<8x1xf32>
    %33 = vector.broadcast %32 : vector<8x1xf32> to vector<8x32xf32>
    %34 = vector.extract_strided_slice %15 {offsets = [0, 6], sizes = [8, 1], strides = [1, 1]} : vector<8x8xf32> to vector<8x1xf32>
    %35 = vector.shape_cast %34 : vector<8x1xf32> to vector<8x1xf32>
    %36 = vector.broadcast %35 : vector<8x1xf32> to vector<8x32xf32>
    %37 = vector.extract_strided_slice %15 {offsets = [0, 7], sizes = [8, 1], strides = [1, 1]} : vector<8x8xf32> to vector<8x1xf32>
    %38 = vector.shape_cast %37 : vector<8x1xf32> to vector<8x1xf32>
    %39 = vector.broadcast %38 : vector<8x1xf32> to vector<8x32xf32>
    %40 = tpu.concatenate %18, %21, %24, %27, %30, %33, %36, %39 in 1 : vector<8x32xf32>, vector<8x32xf32>, vector<8x32xf32>, vector<8x32xf32>, vector<8x32xf32>, vector<8x32xf32>, vector<8x32xf32>, vector<8x32xf32> -> vector<8x256xf32>
    %41 = vector.broadcast %13 : i32 to vector<8x256xi32>
    %42 = arith.cmpi slt, %10, %41 : vector<8x256xi32>
    %43 = arith.mulf %40, %3 : vector<8x256xf32>
    %44 = arith.addf %43, %6 : vector<8x256xf32>
    %45 = arith.select %42, %44, %9 : vector<8x256xi1>, vector<8x256xf32>
    %c0_8 = arith.constant 0 : index
    %c0_9 = arith.constant 0 : index
    %c0_10 = arith.constant 0 : index
    %46 = vector.load %arg6[%c0_8, %c0_9, %c0_10] : memref<2x8x256xf32, #tpu.memory_space<vmem>>, vector<1x8x256xf32>
    %47 = vector.shape_cast %46 : vector<1x8x256xf32> to vector<8x256xf32>
    %48 = vector.shape_cast %45 : vector<8x256xf32> to vector<1x8x256xf32>
    tpu.vector_store %arg6[%c0_8, %c0_9, %c0_10], %48 {strides = array<i32>} : memref<2x8x256xf32, #tpu.memory_space<vmem>>, vector<1x8x256xf32>,
    %c1_i32 = arith.constant 1 : i32
    %49 = arith.addi %0, %c1_i32 : i32
    %50 = arith.index_cast %49 : i32 to index
    %51 = memref.load %arg1[%50] : memref<2xi32, #tpu.memory_space<smem>>
    %c1 = arith.constant 1 : index
    %c0_11 = arith.constant 0 : index
    %c0_12 = arith.constant 0 : index
    %52 = vector.load %arg2[%c1, %c0_11, %c0_12] : memref<2x8x8xf32, #tpu.memory_space<vmem>>, vector<1x8x8xf32>
    %53 = vector.shape_cast %52 : vector<1x8x8xf32> to vector<8x8xf32>
    %54 = vector.extract_strided_slice %53 {offsets = [0, 0], sizes = [8, 1], strides = [1, 1]} : vector<8x8xf32> to vector<8x1xf32>
    %55 = vector.shape_cast %54 : vector<8x1xf32> to vector<8x1xf32>
    %56 = vector.broadcast %55 : vector<8x1xf32> to vector<8x32xf32>
    %57 = vector.extract_strided_slice %53 {offsets = [0, 1], sizes = [8, 1], strides = [1, 1]} : vector<8x8xf32> to vector<8x1xf32>
    %58 = vector.shape_cast %57 : vector<8x1xf32> to vector<8x1xf32>
    %59 = vector.broadcast %58 : vector<8x1xf32> to vector<8x32xf32>
    %60 = vector.extract_strided_slice %53 {offsets = [0, 2], sizes = [8, 1], strides = [1, 1]} : vector<8x8xf32> to vector<8x1xf32>
    %61 = vector.shape_cast %60 : vector<8x1xf32> to vector<8x1xf32>
    %62 = vector.broadcast %61 : vector<8x1xf32> to vector<8x32xf32>
    %63 = vector.extract_strided_slice %53 {offsets = [0, 3], sizes = [8, 1], strides = [1, 1]} : vector<8x8xf32> to vector<8x1xf32>
    %64 = vector.shape_cast %63 : vector<8x1xf32> to vector<8x1xf32>
    %65 = vector.broadcast %64 : vector<8x1xf32> to vector<8x32xf32>
    %66 = vector.extract_strided_slice %53 {offsets = [0, 4], sizes = [8, 1], strides = [1, 1]} : vector<8x8xf32> to vector<8x1xf32>
    %67 = vector.shape_cast %66 : vector<8x1xf32> to vector<8x1xf32>
    %68 = vector.broadcast %67 : vector<8x1xf32> to vector<8x32xf32>
    %69 = vector.extract_strided_slice %53 {offsets = [0, 5], sizes = [8, 1], strides = [1, 1]} : vector<8x8xf32> to vector<8x1xf32>
    %70 = vector.shape_cast %69 : vector<8x1xf32> to vector<8x1xf32>
    %71 = vector.broadcast %70 : vector<8x1xf32> to vector<8x32xf32>
    %72 = vector.extract_strided_slice %53 {offsets = [0, 6], sizes = [8, 1], strides = [1, 1]} : vector<8x8xf32> to vector<8x1xf32>
    %73 = vector.shape_cast %72 : vector<8x1xf32> to vector<8x1xf32>
    %74 = vector.broadcast %73 : vector<8x1xf32> to vector<8x32xf32>
    %75 = vector.extract_strided_slice %53 {offsets = [0, 7], sizes = [8, 1], strides = [1, 1]} : vector<8x8xf32> to vector<8x1xf32>
    %76 = vector.shape_cast %75 : vector<8x1xf32> to vector<8x1xf32>
    %77 = vector.broadcast %76 : vector<8x1xf32> to vector<8x32xf32>
    %78 = tpu.concatenate %56, %59, %62, %65, %68, %71, %74, %77 in 1 : vector<8x32xf32>, vector<8x32xf32>, vector<8x32xf32>, vector<8x32xf32>, vector<8x32xf32>, vector<8x32xf32>, vector<8x32xf32>, vector<8x32xf32> -> vector<8x256xf32>
    %79 = vector.broadcast %51 : i32 to vector<8x256xi32>
    %80 = arith.cmpi slt, %10, %79 : vector<8x256xi32>
    %81 = arith.mulf %78, %3 : vector<8x256xf32>
    %82 = arith.addf %81, %6 : vector<8x256xf32>
    %83 = arith.select %80, %82, %9 : vector<8x256xi1>, vector<8x256xf32>
    %c1_13 = arith.constant 1 : index
    %c0_14 = arith.constant 0 : index
    %c0_15 = arith.constant 0 : index
    %84 = vector.load %arg6[%c1_13, %c0_14, %c0_15] : memref<2x8x256xf32, #tpu.memory_space<vmem>>, vector<1x8x256xf32>
    %85 = vector.shape_cast %84 : vector<1x8x256xf32> to vector<8x256xf32>
    %86 = vector.shape_cast %83 : vector<8x256xf32> to vector<1x8x256xf32>
    tpu.vector_store %arg6[%c1_13, %c0_14, %c0_15], %86 {strides = array<i32>} : memref<2x8x256xf32, #tpu.memory_space<vmem>>, vector<1x8x256xf32>,
    return
  }
  func.func @transform_0(%arg0: i32, %arg1: memref<2xi32, #tpu.memory_space<smem>>) -> (i32, i32, i32) {
    %c0_i32 = arith.constant 0 : i32
    %c0_i32_0 = arith.constant 0 : i32
    %c0_i32_1 = arith.constant 0 : i32
    return %arg0, %c0_i32, %c0_i32_0 : i32, i32, i32
  }
  func.func @transform_1(%arg0: i32, %arg1: memref<2xi32, #tpu.memory_space<smem>>) -> (i32, i32) {
    %c0_i32 = arith.constant 0 : i32
    %c0_i32_0 = arith.constant 0 : i32
    %c0_i32_1 = arith.constant 0 : i32
    return %c0_i32, %c0_i32_0 : i32, i32
  }
  func.func @transform_2(%arg0: i32, %arg1: memref<2xi32, #tpu.memory_space<smem>>) -> (i32, i32) {
    %c0_i32 = arith.constant 0 : i32
    %c0_i32_0 = arith.constant 0 : i32
    %c0_i32_1 = arith.constant 0 : i32
    return %c0_i32, %c0_i32_0 : i32, i32
  }
  func.func @transform_3(%arg0: i32, %arg1: memref<2xi32, #tpu.memory_space<smem>>) -> (i32, i32) {
    %c0_i32 = arith.constant 0 : i32
    %c0_i32_0 = arith.constant 0 : i32
    %c0_i32_1 = arith.constant 0 : i32
    return %c0_i32, %c0_i32_0 : i32, i32
  }
  func.func @transform_4(%arg0: i32, %arg1: memref<2xi32, #tpu.memory_space<smem>>) -> (i32, i32, i32) {
    %c0_i32 = arith.constant 0 : i32
    %c0_i32_0 = arith.constant 0 : i32
    %c0_i32_1 = arith.constant 0 : i32
    return %arg0, %c0_i32, %c0_i32_0 : i32, i32, i32
  }
}

</mosaic_0001>

<bundles_post_ra>
// kernel: tpu_custom_call.1
= control target key start
LH: loop header
LB: loop body
LE: loop exit
PB: predicated region body
PF: predicated region fallthrough
CT: control target
= control target key end

     0   :  { %s400_s0 = inlined_call_operand.hbm [shape: s32[2], index: 0, kind: input, shape index: {}]   ;;  %s401_s1 = inlined_call_operand.hbm [shape: f32[2,8,8], index: 1, kind: input, shape index: {}]   ;;  %s402_s2 = inlined_call_operand.vmem [shape: f32[1,256], index: 2, kind: input, shape index: {}]   ;;  %s403_s3 = inlined_call_operand.vmem [shape: f32[1,256], index: 3, kind: input, shape index: {}]   ;;  %s404_s4 = inlined_call_operand.vmem [shape: f32[1,256], index: 4, kind: input, shape index: {}]   ;;  %s405_s5 = inlined_call_operand.hbm [shape: f32[2,8,256], index: 5, kind: output, shape index: {}]  }
   0x1   :  { %s230_s20 = scalar_lea.hbm %s400_s0, 16 }
   0x2   :  { %p231_p0 = scmp.ne.s32.totalorder %s400_s0, %s230_s20  ;;  %p234_p1 = scmp.lt.u32.totalorder %s230_s20, %s400_s0 }
   0x4   :  { %p236_p2 = pnand %p234_p1, %p231_p0 }
   0x6   :  { %239 = shalt.err (!%p236_p2)  }
   0x7   :  { %s290_s25 = smov [#allocation3]  }
   0x8   :  { %11 = dma.hbm_to_smem %s400_s0, 16, %s290_s25, [#allocation2] }
   0x9   :  { %284 = dma.done.wait [#allocation2], 16 }
   0xa   :  { %285 = vsyncadd [#allocation2], 4294967280 }
   0xb   :  { %13 = sfence }
   0xc   :  { %14 = vsyncpa [#allocation5], 0 }
   0xd   :  { %15 = vsyncpa [#allocation6], 0  ;;  %s291_s28 = smov [#allocation4]   ;;  %s240_s7 = scalar_lea.hbm %s401_s1, 256 }
   0xe   :  { %s21_s29 = sshll.u32 %s291_s28, 4  ;;  %p241_p3 = scmp.ne.s32.totalorder %s401_s1, %s240_s7  ;;  %s22_s29 = int_to_ptr.vmem [resolvable:$true] %s21_s29 }
   0xf   :  { %p244_p4 = scmp.lt.u32.totalorder %s240_s7, %s401_s1 }
  0x11   :  { %p246_p5 = pnand %p244_p4, %p241_p3 }
  0x13   :  { %249 = shalt.err (!%p246_p5)
}
  0x14   :  { %s250_s0 = scalar_lea.vmem %s22_s29, 256  ;;  %p255_p7 = scmp.lt.s32.totalorder %s22_s29, %s22_s29 }
  0x15   :  { %p251_p6 = scmp.ne.s32.totalorder %s22_s29, %s250_s0  ;;  %p256_p8 = scmp.lt.s32.totalorder %s250_s0, %s250_s0 }
  0x17   :  { %p257_p9 = por %p256_p8, %p255_p7 }
  0x19   :  { %p258_p10 = pnand %p257_p9, %p251_p6 }
  0x1b   :  { %261 = shalt.err (!%p258_p10)
}
  0x1c   :  { %s292_s12 = smov 128   ;;  %s293_s13 = smov 8  }
  0x1d   :  { %27 = dma.hbm_to_vmem [thread:$0]  %s401_s1, 256, %s22_s29, [#allocation5], %s292_s12, %s292_s12, %s293_s13  }
  0x1e   :  { %286 = dma.done.wait [#allocation5], 256  }
  0x1f   :  { %287 = vsyncadd [#allocation5], 4294967040  ;;  %v294_v0 = vmov 4   ;;  %v295_v1 = vmov 0   ;;  %v77_v2 = vld [vmem:[#allocation4] sm:$0xff]  ;;  %v296_v3 = vmov 5   ;;  %v40_v16 = vlaneseq }
  0x20   :  { %219 = vset.pattern.permute.xlu1 %v294_v0  ;;  %217 = vset.pattern.permute.xlu0 %v295_v1  ;;  %v297_v4 = vmov 1   ;;  %v133_v5 = vld [vmem:[#allocation4 + $0x8] sm:$0xff]  ;;  %v298_v6 = vmov 2   ;;  %v299_v7 = vmov 7   ;;  %v300_v8 = vmov 6   ;;  %s76_s1 = sld [smem:[#allocation3]] }
  0x21   :  { %96 = vperm.xlu1 %219, %v77_v2   ;;  %80 = vperm.xlu0 %217, %v77_v2   ;;  %v301_v9 = vmov 3   ;;  %v41_v19 = vshrl.u32 %v40_v16, 7  ;;  %v38_v23 = vld [vmem:[%s402_s2] sm:$0x3]  ;;  %vm111_vm0 = vcmask 261120   ;;  %vm115_vm1 = vcmask 785408  }
  0x22   :  { %v50_v24 = vld [vmem:[%s403_s3] sm:$0x3]  ;;  %vm113_vm2 = vcmask 523264   ;;  %s201_s2 = sld [smem:[#allocation3 + $0x1]]  ;;  %s302_s3 = smov [#allocation7]  }
  0x23   :  { %v46_v22 = vsub.s32 1, %v41_v19  ;;  %v62_v29 = vld [vmem:[%s404_s4] sm:$0x3]  ;;  %v42_v36 = vsub.s32 0, %v41_v19  ;;  %s189_s4 = sshll.u32 %s302_s3, 4  ;;  %s190_s4 = int_to_ptr.vmem [resolvable:$true] %s189_s4 }
  0x24   :  { %s262_s22 = scalar_lea.vmem %s190_s4, 512  ;;  %p267_p12 = scmp.lt.s32.totalorder %s190_s4, %s190_s4 }
  0x25   :  { %220 = vset.pattern.permute.xlu1 %v296_v3  ;;  %218 = vset.pattern.permute.xlu0 %v297_v4  ;;  %v47_v26 = vrot.slane %v38_v23, %v46_v22  ;;  %v59_v31 = vrot.slane %v50_v24, %v46_v22  ;;  %v71_v34 = vrot.slane %v62_v29, %v46_v22  ;;  %p263_p11 = scmp.ne.s32.totalorder %s190_s4, %s262_s22  ;;  %p268_p13 = scmp.lt.s32.totalorder %s262_s22, %s262_s22 }
  0x26   :  { %100 = vperm.xlu1 %220, %v77_v2   ;;  %84 = vperm.xlu0 %218, %v77_v2   ;;  %v120_v32 = vstv %s76_s1  ;;  %v43_v42 = vrot.slane %v38_v23, %v42_v36  ;;  %v55_v45 = vrot.slane %v50_v24, %v42_v36  ;;  %v67_v47 = vrot.slane %v62_v29, %v42_v36 }
  0x27   :  { %vm371_vm3 = vcmp.lt.s32.totalorder %v41_v19, %v120_v32  ;;  %p269_p0 = por %p268_p13, %p267_p12 }
  0x28   :  { %v173_v52 = vstv %s201_s2 }
  0x29   :  { %vm174_vm4 = vcmp.lt.s32.totalorder %v41_v19, %v173_v52  ;;  %p270_p1 = pnand %p269_p0, %p263_p11 }
  0x2a   :  { %221 = vset.pattern.permute.xlu1 %v295_v1  ;;  %140 = vperm.xlu0 %218, %v133_v5  }
  0x2b   :  { %136 = vperm.xlu1 %221, %v133_v5  }
  0x2e   :  { %223 = vset.pattern.permute.xlu0 %v296_v3 }
  0x2f   :  { %222 = vset.pattern.permute.xlu1 %v294_v0  ;;  %156 = vperm.xlu0 %223, %v133_v5  }
  0x30   :  { %152 = vperm.xlu1 %222, %v133_v5  }
  0x33   :  { %226 = vset.pattern.permute.xlu0 %v298_v6 }
  0x34   :  { %224 = vset.pattern.permute.xlu1 %v298_v6  ;;  %144 = vperm.xlu0 %226, %v133_v5  }
  0x35   :  { %88 = vperm.xlu1 %224, %v77_v2  }
  0x38   :  { %228 = vset.pattern.permute.xlu0 %v299_v7 }
  0x39   :  { %225 = vset.pattern.permute.xlu1 %v300_v8  ;;  %108 = vperm.xlu0 %228, %v77_v2  }
  0x3a   :  { %104 = vperm.xlu1 %225, %v77_v2  }
  0x3e   :  { %160 = vperm.xlu1 %225, %v133_v5  }
  0x42   :  { %227 = vset.pattern.permute.xlu1 %v301_v9 }
  0x43   :  { %92 = vperm.xlu1 %227, %v77_v2  }
  0x47   :  { %148 = vperm.xlu1 %227, %v133_v5  }
  0x4b   :  { %229 = vset.pattern.permute.xlu1 %v299_v7 }
  0x4c   :  { %164 = vperm.xlu1 %229, %v133_v5  }
  0xa0   :  { %v97_v10 = vpop.permute.xlu1 %96  ;;  %v81_v11 = vpop.permute.xlu0 %80 }
  0xa5   :  { %v101_v12 = vpop.permute.xlu1 %100  ;;  %v85_v13 = vpop.permute.xlu0 %84 }
  0xa6   :  { %v117_v27 = vsel %vm111_vm0, %v97_v10, %v101_v12  ;;  %v112_v40 = vsel %vm111_vm0, %v81_v11, %v85_v13 }
  0xa9   :  { %v141_v14 = vpop.permute.xlu0 %140 }
  0xaa   :  { %v137_v15 = vpop.permute.xlu1 %136 }
  0xab   :  { %v167_v49 = vsel %vm111_vm0, %v137_v15, %v141_v14 }
  0xae   :  { %v157_v17 = vpop.permute.xlu0 %156 }
  0xaf   :  { %v153_v18 = vpop.permute.xlu1 %152 }
  0xb0   :  { %v170_v57 = vsel %vm111_vm0, %v153_v18, %v157_v17 }
  0xb3   :  { %v145_v20 = vpop.permute.xlu0 %144 }
  0xb4   :  { %v89_v21 = vpop.permute.xlu1 %88  ;;  %v168_v50 = vsel %vm113_vm2, %v167_v49, %v145_v20 }
  0xb5   :  { %v114_v43 = vsel %vm113_vm2, %v112_v40, %v89_v21 }
  0xb8   :  { %v109_v25 = vpop.permute.xlu0 %108 }
  0xb9   :  { %v105_v28 = vpop.permute.xlu1 %104 }
  0xba   :  { %v118_v30 = vsel %vm113_vm2, %v117_v27, %v105_v28 }
  0xbb   :  { %v119_v33 = vsel %vm115_vm1, %v118_v30, %v109_v25 }
  0xbc   :  { %v123_v35 = vmul.f32 %v119_v33, %v47_v26 }
  0xbd   :  { %v161_v38 = vpop.permute.xlu1 %160 }
  0xbe   :  { %v125_v39 = vadd.f32 %v123_v35, %v59_v31  ;;  %v171_v59 = vsel %vm113_vm2, %v170_v57, %v161_v38 }
  0xc0   :  { %v127_v41 = vsel %vm371_vm3, %v125_v39, %v71_v34 }
  0xc1   :  { %129 = vst [vmem:[#allocation7 + $0x8] sm:$0xff] %v127_v41 }
  0xc2   :  { %v93_v44 = vpop.permute.xlu1 %92 }
  0xc3   :  { %v116_v46 = vsel %vm115_vm1, %v114_v43, %v93_v44 }
  0xc4   :  { %v122_v48 = vmul.f32 %v116_v46, %v43_v42 }
  0xc6   :  { %v124_v51 = vadd.f32 %v122_v48, %v55_v45  ;;  %v149_v53 = vpop.permute.xlu1 %148 }
  0xc7   :  { %v169_v54 = vsel %vm115_vm1, %v168_v50, %v149_v53 }
  0xc8   :  { %v126_v55 = vsel %vm371_vm3, %v124_v51, %v67_v47  ;;  %v175_v56 = vmul.f32 %v169_v54, %v43_v42 }
  0xc9   :  { %128 = vst [vmem:[#allocation7] sm:$0xff] %v126_v55 }
  0xca   :  { %v177_v58 = vadd.f32 %v175_v56, %v55_v45 }
  0xcb   :  { %v165_v60 = vpop.permute.xlu1 %164 }
  0xcc   :  { %v179_v61 = vsel %vm174_vm4, %v177_v58, %v67_v47  ;;  %v172_v62 = vsel %vm115_vm1, %v171_v59, %v165_v60 }
  0xcd   :  { %182 = vst [vmem:[#allocation7 + $0x10] sm:$0xff] %v179_v61  ;;  %v176_v63 = vmul.f32 %v172_v62, %v47_v26 }
  0xcf   :  { %v178_v0 = vadd.f32 %v176_v63, %v59_v31 }
  0xd1   :  { %v180_v1 = vsel %vm174_vm4, %v178_v0, %v71_v34 }
  0xd2   :  { %183 = vst [vmem:[#allocation7 + $0x18] sm:$0xff] %v180_v1 }
  0xd3   :  { %273 = shalt.err (!%p270_p1)
}
  0xd4   :  { %s274_s25 = scalar_lea.hbm %s405_s5, 512 }
  0xd5   :  { %p275_p2 = scmp.ne.s32.totalorder %s405_s5, %s274_s25  ;;  %p278_p3 = scmp.lt.u32.totalorder %s274_s25, %s405_s5 }
  0xd7   :  { %p280_p4 = pnand %p278_p3, %p275_p2 }
  0xd9   :  { %283 = shalt.err (!%p280_p4)
}
  0xda   :  { %s303_s30 = smov 256   ;;  %s304_s6 = smov 16  }
  0xdb   :  { %195 = dma.vmem_to_hbm [thread:$0]  %s190_s4, 512, %s405_s5, [#allocation6], %s303_s30, %s303_s30, %s304_s6  }
  0xdc   :  { %288 = dma.done.wait [#allocation6], 512  }
  0xdd   :  { %289 = vsyncadd [#allocation6], 4294966784 }
  0xde   :  { %199 = vsyncpa [#allocation5], 1 }
  0xdf   :  { %200 = vsyncpa [#allocation6], 1 }

</bundles_post_ra>
